<compile_context>
chip_gen: v7x
topology: tpu7x:2x2x1
jax: 0.10.0
libtpu: 0.0.40
codegen_flags: <defaults>
</compile_context>

<pallas_src>
import jax
import jax.numpy as jnp
from jax.experimental import pallas as pl
from jax.experimental.pallas import tpu as pltpu


def _gather_row_kernel(idx_ref, src_ref, out_ref):
    # idx_ref : SMEM scalar-prefetch, shape (1,), int32 -- already consumed by
    #           the index_map to pick which row was DMA'd; body is a copy.
    # src_ref : VMEM, shape (1, 1, TD) -- the single selected trajectory row
    # out_ref : VMEM, shape (1, TD)
    del idx_ref
    out_ref[...] = src_ref[0]


def _gather_row(source_flat, local_idx):
    """Gather row `local_idx` of source_flat [A, 1, TD] -> [1, TD].

    The scalar-prefetch index drives the input BlockSpec index_map, so only
    the selected (1, 1, TD) tile is DMA'd; the kernel is a pure copy.
    """
    A, _, TD = source_flat.shape
    idx_arr = jnp.array([local_idx], dtype=jnp.int32)

    grid_spec = pltpu.PrefetchScalarGridSpec(
        num_scalar_prefetch=1,
        grid=(1,),
        in_specs=[
            # Block index along the action axis comes straight from SMEM.
            pl.BlockSpec((1, 1, TD), lambda i, idx_ref: (idx_ref[0], 0, 0)),
        ],
        out_specs=pl.BlockSpec((1, TD), lambda i, idx_ref: (0, 0)),
    )

    return pl.pallas_call(
        _gather_row_kernel,
        out_shape=jax.ShapeDtypeStruct((1, TD), source_flat.dtype),
        grid_spec=grid_spec,
        compiler_params=pltpu.CompilerParams(
            dimension_semantics=("arbitrary",)
        ),
    )(idx_arr, source_flat)


def decode_traj_action(traj_action, basic_candidates, samples):
    """JAX/Pallas equivalent of DiscreteTrajActionDecoder.forward.

    traj_action      : scalar int (python int or 0-d array) -- mirrors .item()
    basic_candidates : f32[n_basic, T, D]
    samples          : f32[n_samples, T, D] (stand-in for sampler output)
    returns          : f32[T, D] selected trajectory
    """
    n_basic = basic_candidates.shape[0]
    n_samples = samples.shape[0]
    action_dim = n_basic + n_samples
    assert action_dim > 0

    idx = int(traj_action)  # mirrors traj_action.item() (host-side sync)
    if not (0 <= idx < action_dim):
        raise ValueError("Index out of bound.")

    # Host-side branch, exactly like the module's forward: pick which bank the
    # index falls into.  No concatenation -- we only ever touch one array.
    if idx < n_basic:
        source, local_idx = basic_candidates, idx
    else:
        source, local_idx = samples, idx - n_basic

    A, T, D = source.shape
    # Lane-dense layout: one trajectory -> one row of T*D lanes (128 here).
    src_flat = source.reshape(A, 1, T * D)
    out = _gather_row(src_flat, local_idx)
    return out.reshape(T, D)


def _reference(traj_action, basic_candidates, samples):
    bank = jnp.concatenate([basic_candidates, samples], axis=0)
    return bank[int(traj_action)]


if __name__ == "__main__":
    key = jax.random.PRNGKey(0)
    k_basic, k_obs, k_proj = jax.random.split(key, 3)

    n_basic, n_samples, T, D = 3, 5, 16, 8
    obs_dim = 32

    # Fixed basic candidate trajectories (deterministic).
    basic_candidates = jax.random.normal(k_basic, (n_basic, T, D), jnp.float32)

    # Synthetic deterministic "sampler": samples are a fixed linear function
    # of the observation (plain-JAX glue standing in for the external sampler).
    observation = jax.random.normal(k_obs, (obs_dim,), jnp.float32)
    proj = jax.random.normal(k_proj, (n_samples * T * D, obs_dim), jnp.float32) * 0.1
    samples = (proj @ observation).reshape(n_samples, T, D)

    # Decode one basic-candidate action and one sampled action.
    for traj_action in (1, n_basic + 2):
        out = decode_traj_action(traj_action, basic_candidates, samples)
        out = jax.block_until_ready(out)
        ref = _reference(traj_action, basic_candidates, samples)
        assert out.shape == (T, D)
        assert jnp.allclose(out, ref, atol=1e-6), "mismatch vs reference"

    # Out-of-bound index must raise, as in the PyTorch module.
    try:
        decode_traj_action(n_basic + n_samples, basic_candidates, samples)
        raise AssertionError("expected ValueError")
    except ValueError:
        pass

    print("KERNEL_OK")
</pallas_src>

<mosaic_0001>
module attributes {stable_mosaic.version = 11 : i64} {
  func.func @_gather_row_kernel(%arg0: i32, %arg1: memref<1xi32, #tpu.memory_space<smem>>, %arg2: memref<1x1x128xf32, #tpu.memory_space<vmem>>, %arg3: memref<1x128xf32, #tpu.memory_space<vmem>>) attributes {dimension_semantics = [#tpu.dimension_semantics<arbitrary>], iteration_bounds = array<i64: 1>, scalar_prefetch = 1 : i64, scratch_operands = 0 : i64, tpu.core_type = #tpu.core_type<tc>, window_params = [{transform_indices = @transform_0, window_bounds = array<i64: 1, 1, 128>}, {pipeline_mode = #tpu.pipeline_mode<synchronous>, transform_indices = @transform_1, window_bounds = array<i64: 1, 128>}]} {
    %c0 = arith.constant 0 : index
    %c0_0 = arith.constant 0 : index
    %c0_1 = arith.constant 0 : index
    %0 = vector.load %arg2[%c0, %c0_0, %c0_1] : memref<1x1x128xf32, #tpu.memory_space<vmem>>, vector<1x1x128xf32>
    %1 = vector.shape_cast %0 : vector<1x1x128xf32> to vector<1x128xf32>
    %c0_2 = arith.constant 0 : index
    %c0_3 = arith.constant 0 : index
    %2 = vector.load %arg3[%c0_2, %c0_3] : memref<1x128xf32, #tpu.memory_space<vmem>>, vector<1x128xf32>
    tpu.vector_store %arg3[%c0_2, %c0_3], %1 {strides = array<i32>} : memref<1x128xf32, #tpu.memory_space<vmem>>, vector<1x128xf32>,
    return
  }
  func.func @transform_0(%arg0: i32, %arg1: memref<1xi32, #tpu.memory_space<smem>>) -> (i32, i32, i32) {
    %c0 = arith.constant 0 : index
    %0 = memref.load %arg1[%c0] : memref<1xi32, #tpu.memory_space<smem>>
    %c0_i32 = arith.constant 0 : i32
    %c0_i32_0 = arith.constant 0 : i32
    %c0_i32_1 = arith.constant 0 : i32
    return %0, %c0_i32, %c0_i32_0 : i32, i32, i32
  }
  func.func @transform_1(%arg0: i32, %arg1: memref<1xi32, #tpu.memory_space<smem>>) -> (i32, i32) {
    %c0_i32 = arith.constant 0 : i32
    %c0_i32_0 = arith.constant 0 : i32
    %c0_i32_1 = arith.constant 0 : i32
    return %c0_i32, %c0_i32_0 : i32, i32
  }
}

</mosaic_0001>

<bundles_post_ra>
// kernel: tpu_custom_call.1
= control target key start
LH: loop header
LB: loop body
LE: loop exit
PB: predicated region body
PF: predicated region fallthrough
CT: control target
= control target key end

     0   :  { %s106_s0 = inlined_call_operand.<no memory space> [shape: s32[1], index: 0, kind: input, shape index: {}]   ;;  %s107_s1 = inlined_call_operand.vmem [shape: f32[3,1,128], index: 1, kind: input, shape index: {}]   ;;  %s108_s2 = inlined_call_operand.hbm [shape: f32[1,128], index: 2, kind: output, shape index: {}]  }
   0x1   :  { %p21_p0 = scmp.lt.s32.totalorder %s106_s0, 2 }
   0x2   :  { %8 = vsyncpa [#allocation5], 0  ;;  %s69_s11 = smov [#allocation4]  }
   0x3   :  { %s33_s12 = sshll.u32 %s69_s11, 4  ;;  %s110_s0 = smov (!%p21_p0, %s106_s0), 2  ;;  %s34_s12 = int_to_ptr.vmem [resolvable:$true] %s33_s12 }
   0x4   :  { %s23_s17 = scalar_lea.vmem %s107_s1, %s110_s0  ;;  %s45_s18 = scalar_lea.vmem %s34_s12, 16 }
   0x5   :  { %v25_v0 = vld [vmem:[%s23_s17] sm:$0x1]  ;;  %p46_p1 = scmp.ne.s32.totalorder %s34_s12, %s45_s18  ;;  %s49_s19 = scalar_lea.vmem %s34_s12, 32 }
   0x6   :  { %26 = vst [vmem:[#allocation4] sm:$0x1] %v25_v0  ;;  %p50_p2 = scmp.lt.s32.totalorder %s34_s12, %s34_s12  ;;  %p51_p3 = scmp.lt.s32.totalorder %s49_s19, %s45_s18 }
   0x8   :  { %p52_p4 = por %p51_p3, %p50_p2 }
   0xa   :  { %p53_p5 = pnand %p52_p4, %p46_p1 }
   0xc   :  { %56 = shalt.err (!%p53_p5)
}
   0xd   :  { %s57_s22 = scalar_lea.hbm %s108_s2, 16 }
   0xe   :  { %p58_p6 = scmp.ne.s32.totalorder %s108_s2, %s57_s22  ;;  %p61_p7 = scmp.lt.u32.totalorder %s57_s22, %s108_s2 }
  0x10   :  { %p63_p8 = pnand %p61_p7, %p58_p6 }
  0x12   :  { %66 = shalt.err (!%p63_p8)
}
  0x13   :  { %36 = dma.vmem_to_hbm [thread:$0]  %s34_s12, 16, %s108_s2, [#allocation5]  }
  0x14   :  { %67 = dma.done.wait [#allocation5], 16  }
  0x15   :  { %68 = vsyncadd [#allocation5], 4294967280 }
  0x16   :  { %40 = vsyncpa [#allocation5], 1 }

</bundles_post_ra>
